<compile_context>
chip_gen: v7x
topology: tpu7x:2x2x1
jax: 0.10.0
libtpu: 0.0.40
codegen_flags: <defaults>
</compile_context>

<pallas_src>
import jax
import jax.numpy as jnp
from jax.experimental import pallas as pl
from jax.experimental.pallas import tpu as pltpu


def rollout_kernel(x_ref, w1_ref, b1_ref, w2_ref, b2_ref, out_ref, state_ref):
    """One grid iteration == one chunk of `Tc` stepper applications.

    The running state lives in a VMEM scratch buffer so it persists across
    grid iterations (the rollout is inherently sequential -> 'arbitrary').
    Each chunk emits one lane-dense (B, D, Tc) slab of the rollout.
    """
    B, D = x_ref.shape
    H = w1_ref.shape[1]
    Tc = out_ref.shape[-1]          # steps in this chunk (static)

    # Initialize the carried state from the input on the first chunk only.
    @pl.when(pl.program_id(0) == 0)
    def _():
        state_ref[...] = x_ref[...]

    # Hoist loop-invariant work out of the per-step dependent chain: read the
    # weights once and pre-broadcast the biases once per chunk (JAX does not
    # CSE broadcast_in_dim, so `+ b` inside the unrolled loop would
    # re-broadcast every step).
    w1 = w1_ref[...]
    w2 = w2_ref[...]
    b1 = jnp.broadcast_to(b1_ref[...], (B, H))
    b2 = jnp.broadcast_to(b2_ref[...], (B, D))

    x = state_ref[...]
    steps = []
    # Static unroll of Tc tiny dependent MLP steps per grid iteration.
    for _ in range(Tc):
        h = jnp.dot(x, w1, preferred_element_type=jnp.float32) + b1
        h = jnp.maximum(h, 0.0)                                   # ReLU, (B, H)
        x = jnp.dot(h, w2, preferred_element_type=jnp.float32) + b2  # (B, D)
        steps.append(x)

    # Carry the state to the next chunk and emit one lane-dense output slab
    # (steps on the lane axis) -- a single store per chunk, already in
    # torch.dstack layout so the wrapper needs no transpose.
    state_ref[...] = x
    out_ref[...] = jnp.stack(steps, axis=-1).astype(out_ref.dtype)


def rollout_model(x, w1, b1, w2, b2, n_steps, max_chunk_steps=128):
    """Pallas equivalent of RolloutModel.forward (save_every=1).

    Returns (B, D, n_steps) == torch.dstack of the per-step states.
    """
    B, D = x.shape
    H = w1.shape[1]

    if n_steps <= max_chunk_steps:
        # Single chunk: the output block spans the full step axis, so the
        # chunk length is unconstrained.
        chunk = n_steps
        n_padded = n_steps
    else:
        # Multiple chunks: the step (lane) axis of the output block must be a
        # multiple of 128; run a few padded steps and slice them off.
        chunk = 128
        n_padded = ((n_steps + chunk - 1) // chunk) * chunk
    num_chunks = n_padded // chunk

    # VMEM budget (v7x-safe): double-buffered (B, D, chunk) output slabs plus
    # the tiny resident weights/state are « 32 MiB scoped VMEM.
    out = pl.pallas_call(
        rollout_kernel,
        out_shape=jax.ShapeDtypeStruct((B, D, n_padded), jnp.float32),
        grid=(num_chunks,),
        in_specs=[
            # Constant index maps -> operands stay resident in VMEM across
            # the whole rollout (no per-chunk re-fetch of fresh tiles).
            pl.BlockSpec((B, D), lambda c: (0, 0)),   # x  (initial state)
            pl.BlockSpec((D, H), lambda c: (0, 0)),   # W1
            pl.BlockSpec((1, H), lambda c: (0, 0)),   # b1
            pl.BlockSpec((H, D), lambda c: (0, 0)),   # W2
            pl.BlockSpec((1, D), lambda c: (0, 0)),   # b2
        ],
        out_specs=pl.BlockSpec((B, D, chunk), lambda c: (0, 0, c)),
        scratch_shapes=[pltpu.VMEM((B, D), jnp.float32)],   # carried state
        compiler_params=pltpu.CompilerParams(
            # The chunk axis is a sequential rollout dependency.
            dimension_semantics=("arbitrary",),
        ),
    )(x, w1, b1, w2, b2)

    if n_padded != n_steps:
        out = out[:, :, :n_steps]
    return out


def rollout_reference(x, w1, b1, w2, b2, n_steps):
    """Pure-JAX reference reproducing RolloutModel.forward."""
    outs = []
    for _ in range(n_steps):
        h = jnp.maximum(x @ w1 + b1, 0.0)
        x = h @ w2 + b2
        outs.append(x)
    return jnp.stack(outs, axis=-1)  # (B, D, n_steps) == torch.dstack


if __name__ == "__main__":
    B, D, H = 8, 16, 32          # batch, n_species, hidden

    key = jax.random.PRNGKey(0)
    kx, k1, k2, k3, k4 = jax.random.split(key, 5)

    x = jax.random.normal(kx, (B, D), dtype=jnp.float32)
    # Deterministic, small-magnitude synthetic stepper weights.
    w1 = jax.random.normal(k1, (D, H), dtype=jnp.float32) * 0.1
    b1 = jax.random.normal(k2, (1, H), dtype=jnp.float32) * 0.1
    w2 = jax.random.normal(k3, (H, D), dtype=jnp.float32) * 0.1
    b2 = jax.random.normal(k4, (1, D), dtype=jnp.float32) * 0.1

    # Short and medium rollouts (both single-chunk at these demo sizes).
    for n_steps in (4, 48):
        out = jax.block_until_ready(rollout_model(x, w1, b1, w2, b2, n_steps))
        ref = rollout_reference(x, w1, b1[0], w2, b2[0], n_steps)
        assert out.shape == (B, D, n_steps)
        assert jnp.allclose(out, ref, atol=2e-4, rtol=1e-3), float(
            jnp.max(jnp.abs(out - ref)))

    print("KERNEL_OK")
</pallas_src>

<mosaic_0001>
module attributes {stable_mosaic.version = 11 : i64} {
  func.func @rollout_kernel(%arg0: i32, %arg1: memref<8x16xf32, #tpu.memory_space<vmem>>, %arg2: memref<16x32xf32, #tpu.memory_space<vmem>>, %arg3: memref<1x32xf32, #tpu.memory_space<vmem>>, %arg4: memref<32x16xf32, #tpu.memory_space<vmem>>, %arg5: memref<1x16xf32, #tpu.memory_space<vmem>>, %arg6: memref<8x16x4xf32, #tpu.memory_space<vmem>>, %arg7: memref<8x16xf32, #tpu.memory_space<vmem>>) attributes {dimension_semantics = [#tpu.dimension_semantics<arbitrary>], iteration_bounds = array<i64: 1>, scalar_prefetch = 0 : i64, scratch_operands = 1 : i64, tpu.core_type = #tpu.core_type<tc>, window_params = [{pipeline_mode = #tpu.pipeline_mode<synchronous>, transform_indices = @transform_0, window_bounds = array<i64: 8, 16>}, {pipeline_mode = #tpu.pipeline_mode<synchronous>, transform_indices = @transform_1, window_bounds = array<i64: 16, 32>}, {pipeline_mode = #tpu.pipeline_mode<synchronous>, transform_indices = @transform_2, window_bounds = array<i64: 1, 32>}, {pipeline_mode = #tpu.pipeline_mode<synchronous>, transform_indices = @transform_3, window_bounds = array<i64: 32, 16>}, {pipeline_mode = #tpu.pipeline_mode<synchronous>, transform_indices = @transform_4, window_bounds = array<i64: 1, 16>}, {transform_indices = @transform_5, window_bounds = array<i64: 8, 16, 4>}]} {
    %c0_i32 = arith.constant 0 : i32
    %0 = arith.cmpi eq, %arg0, %c0_i32 : i32
    %1 = arith.extui %0 : i1 to i32
    %c0_i32_0 = arith.constant 0 : i32
    %2 = arith.cmpi ne, %1, %c0_i32_0 : i32
    scf.if %2 {
      %c0_26 = arith.constant 0 : index
      %c0_27 = arith.constant 0 : index
      %43 = vector.load %arg1[%c0_26, %c0_27] : memref<8x16xf32, #tpu.memory_space<vmem>>, vector<8x16xf32>
      %c0_28 = arith.constant 0 : index
      %c0_29 = arith.constant 0 : index
      %44 = vector.load %arg7[%c0_28, %c0_29] : memref<8x16xf32, #tpu.memory_space<vmem>>, vector<8x16xf32>
      tpu.vector_store %arg7[%c0_28, %c0_29], %43 {strides = array<i32>} : memref<8x16xf32, #tpu.memory_space<vmem>>, vector<8x16xf32>,
    } else {
    }
    %c0 = arith.constant 0 : index
    %c0_1 = arith.constant 0 : index
    %3 = vector.load %arg2[%c0, %c0_1] : memref<16x32xf32, #tpu.memory_space<vmem>>, vector<16x32xf32>
    %c0_2 = arith.constant 0 : index
    %c0_3 = arith.constant 0 : index
    %4 = vector.load %arg4[%c0_2, %c0_3] : memref<32x16xf32, #tpu.memory_space<vmem>>, vector<32x16xf32>
    %c0_4 = arith.constant 0 : index
    %c0_5 = arith.constant 0 : index
    %5 = vector.load %arg3[%c0_4, %c0_5] : memref<1x32xf32, #tpu.memory_space<vmem>>, vector<1x32xf32>
    %6 = vector.shape_cast %5 : vector<1x32xf32> to vector<1x32xf32>
    %7 = vector.broadcast %6 : vector<1x32xf32> to vector<8x32xf32>
    %c0_6 = arith.constant 0 : index
    %c0_7 = arith.constant 0 : index
    %8 = vector.load %arg5[%c0_6, %c0_7] : memref<1x16xf32, #tpu.memory_space<vmem>>, vector<1x16xf32>
    %9 = vector.shape_cast %8 : vector<1x16xf32> to vector<1x16xf32>
    %10 = vector.broadcast %9 : vector<1x16xf32> to vector<8x16xf32>
    %c0_8 = arith.constant 0 : index
    %c0_9 = arith.constant 0 : index
    %11 = vector.load %arg7[%c0_8, %c0_9] : memref<8x16xf32, #tpu.memory_space<vmem>>, vector<8x16xf32>
    %cst = arith.constant dense<0.000000e+00> : vector<8x32xf32>
    %12 = tpu.matmul %11, %3, %cst {dimension_numbers = #tpu.dot_dimension_numbers<[1], [0], [0], [1], [0, 0, 1, 1], [], []>} : vector<8x16xf32>, vector<16x32xf32>, vector<8x32xf32> -> vector<8x32xf32>
    %13 = arith.addf %12, %7 : vector<8x32xf32>
    %cst_10 = arith.constant 0.000000e+00 : f32
    %14 = vector.broadcast %cst_10 : f32 to vector<8x32xf32>
    %15 = arith.maximumf %13, %14 : vector<8x32xf32>
    %cst_11 = arith.constant dense<0.000000e+00> : vector<8x16xf32>
    %16 = tpu.matmul %15, %4, %cst_11 {dimension_numbers = #tpu.dot_dimension_numbers<[1], [0], [0], [1], [0, 0, 1, 1], [], []>} : vector<8x32xf32>, vector<32x16xf32>, vector<8x16xf32> -> vector<8x16xf32>
    %17 = arith.addf %16, %10 : vector<8x16xf32>
    %cst_12 = arith.constant dense<0.000000e+00> : vector<8x32xf32>
    %18 = tpu.matmul %17, %3, %cst_12 {dimension_numbers = #tpu.dot_dimension_numbers<[1], [0], [0], [1], [0, 0, 1, 1], [], []>} : vector<8x16xf32>, vector<16x32xf32>, vector<8x32xf32> -> vector<8x32xf32>
    %19 = arith.addf %18, %7 : vector<8x32xf32>
    %cst_13 = arith.constant 0.000000e+00 : f32
    %20 = vector.broadcast %cst_13 : f32 to vector<8x32xf32>
    %21 = arith.maximumf %19, %20 : vector<8x32xf32>
    %cst_14 = arith.constant dense<0.000000e+00> : vector<8x16xf32>
    %22 = tpu.matmul %21, %4, %cst_14 {dimension_numbers = #tpu.dot_dimension_numbers<[1], [0], [0], [1], [0, 0, 1, 1], [], []>} : vector<8x32xf32>, vector<32x16xf32>, vector<8x16xf32> -> vector<8x16xf32>
    %23 = arith.addf %22, %10 : vector<8x16xf32>
    %cst_15 = arith.constant dense<0.000000e+00> : vector<8x32xf32>
    %24 = tpu.matmul %23, %3, %cst_15 {dimension_numbers = #tpu.dot_dimension_numbers<[1], [0], [0], [1], [0, 0, 1, 1], [], []>} : vector<8x16xf32>, vector<16x32xf32>, vector<8x32xf32> -> vector<8x32xf32>
    %25 = arith.addf %24, %7 : vector<8x32xf32>
    %cst_16 = arith.constant 0.000000e+00 : f32
    %26 = vector.broadcast %cst_16 : f32 to vector<8x32xf32>
    %27 = arith.maximumf %25, %26 : vector<8x32xf32>
    %cst_17 = arith.constant dense<0.000000e+00> : vector<8x16xf32>
    %28 = tpu.matmul %27, %4, %cst_17 {dimension_numbers = #tpu.dot_dimension_numbers<[1], [0], [0], [1], [0, 0, 1, 1], [], []>} : vector<8x32xf32>, vector<32x16xf32>, vector<8x16xf32> -> vector<8x16xf32>
    %29 = arith.addf %28, %10 : vector<8x16xf32>
    %cst_18 = arith.constant dense<0.000000e+00> : vector<8x32xf32>
    %30 = tpu.matmul %29, %3, %cst_18 {dimension_numbers = #tpu.dot_dimension_numbers<[1], [0], [0], [1], [0, 0, 1, 1], [], []>} : vector<8x16xf32>, vector<16x32xf32>, vector<8x32xf32> -> vector<8x32xf32>
    %31 = arith.addf %30, %7 : vector<8x32xf32>
    %cst_19 = arith.constant 0.000000e+00 : f32
    %32 = vector.broadcast %cst_19 : f32 to vector<8x32xf32>
    %33 = arith.maximumf %31, %32 : vector<8x32xf32>
    %cst_20 = arith.constant dense<0.000000e+00> : vector<8x16xf32>
    %34 = tpu.matmul %33, %4, %cst_20 {dimension_numbers = #tpu.dot_dimension_numbers<[1], [0], [0], [1], [0, 0, 1, 1], [], []>} : vector<8x32xf32>, vector<32x16xf32>, vector<8x16xf32> -> vector<8x16xf32>
    %35 = arith.addf %34, %10 : vector<8x16xf32>
    %c0_21 = arith.constant 0 : index
    %c0_22 = arith.constant 0 : index
    %36 = vector.load %arg7[%c0_21, %c0_22] : memref<8x16xf32, #tpu.memory_space<vmem>>, vector<8x16xf32>
    tpu.vector_store %arg7[%c0_21, %c0_22], %35 {strides = array<i32>} : memref<8x16xf32, #tpu.memory_space<vmem>>, vector<8x16xf32>,
    %37 = vector.shape_cast %17 : vector<8x16xf32> to vector<8x16x1xf32>
    %38 = vector.shape_cast %23 : vector<8x16xf32> to vector<8x16x1xf32>
    %39 = vector.shape_cast %29 : vector<8x16xf32> to vector<8x16x1xf32>
    %40 = vector.shape_cast %35 : vector<8x16xf32> to vector<8x16x1xf32>
    %41 = tpu.concatenate %37, %38, %39, %40 in 2 : vector<8x16x1xf32>, vector<8x16x1xf32>, vector<8x16x1xf32>, vector<8x16x1xf32> -> vector<8x16x4xf32>
    %c0_23 = arith.constant 0 : index
    %c0_24 = arith.constant 0 : index
    %c0_25 = arith.constant 0 : index
    %42 = vector.load %arg6[%c0_23, %c0_24, %c0_25] : memref<8x16x4xf32, #tpu.memory_space<vmem>>, vector<8x16x4xf32>
    tpu.vector_store %arg6[%c0_23, %c0_24, %c0_25], %41 {strides = array<i32>} : memref<8x16x4xf32, #tpu.memory_space<vmem>>, vector<8x16x4xf32>,
    return
  }
  func.func @transform_0(%arg0: i32) -> (i32, i32) {
    %c0_i32 = arith.constant 0 : i32
    %c0_i32_0 = arith.constant 0 : i32
    %c0_i32_1 = arith.constant 0 : i32
    return %c0_i32, %c0_i32_0 : i32, i32
  }
  func.func @transform_1(%arg0: i32) -> (i32, i32) {
    %c0_i32 = arith.constant 0 : i32
    %c0_i32_0 = arith.constant 0 : i32
    %c0_i32_1 = arith.constant 0 : i32
    return %c0_i32, %c0_i32_0 : i32, i32
  }
  func.func @transform_2(%arg0: i32) -> (i32, i32) {
    %c0_i32 = arith.constant 0 : i32
    %c0_i32_0 = arith.constant 0 : i32
    %c0_i32_1 = arith.constant 0 : i32
    return %c0_i32, %c0_i32_0 : i32, i32
  }
  func.func @transform_3(%arg0: i32) -> (i32, i32) {
    %c0_i32 = arith.constant 0 : i32
    %c0_i32_0 = arith.constant 0 : i32
    %c0_i32_1 = arith.constant 0 : i32
    return %c0_i32, %c0_i32_0 : i32, i32
  }
  func.func @transform_4(%arg0: i32) -> (i32, i32) {
    %c0_i32 = arith.constant 0 : i32
    %c0_i32_0 = arith.constant 0 : i32
    %c0_i32_1 = arith.constant 0 : i32
    return %c0_i32, %c0_i32_0 : i32, i32
  }
  func.func @transform_5(%arg0: i32) -> (i32, i32, i32) {
    %c0_i32 = arith.constant 0 : i32
    %c0_i32_0 = arith.constant 0 : i32
    %c0_i32_1 = arith.constant 0 : i32
    return %c0_i32, %c0_i32_0, %arg0 : i32, i32, i32
  }
}

</mosaic_0001>

<bundles_post_ra>
// kernel: tpu_custom_call.1
= control target key start
LH: loop header
LB: loop body
LE: loop exit
PB: predicated region body
PF: predicated region fallthrough
CT: control target
= control target key end

     0   :  { %vm25_vm0 = vcmask 130048   ;;  %v1216_v0 = vmov 0.0|0.0   ;;  %vm1217_vm1 = vmmov 0   ;;  %v1218_v3 = vmov 0.0   ;;  %s1594_s1 = inlined_call_operand.vmem [shape: f32[16,32], index: 1, kind: input, shape index: {}]   ;;  %s1595_s0 = inlined_call_operand.vmem [shape: f32[8,16], index: 0, kind: input, shape index: {}]   ;;  %s1596_s3 = inlined_call_operand.vmem [shape: f32[32,16], index: 3, kind: input, shape index: {}]   ;;  %s1597_s2 = inlined_call_operand.vmem [shape: f32[1,32], index: 2, kind: input, shape index: {}]   ;;  %s1598_s4 = inlined_call_operand.vmem [shape: f32[1,16], index: 4, kind: input, shape index: {}]   ;;  %s1599_s5 = inlined_call_operand.vmem [shape: f32[8,16,4], index: 5, kind: output, shape index: {}]  }
   0x1   :  { %1177 = vmatprep.subr.bf16.mxu1 %v1216_v0  ;;  %v27_v1 = vld [vmem:[%s1594_s1] sm:$0xff]  ;;  %v28_v2 = vld [vmem:[%s1594_s1 + $0x8] sm:$0xff]  ;;  %1109 = vmatprep.mubr.msk.f32.mxu1 %vm1217_vm1, %v1218_v3  ;;  %v31_v10 = vld [vmem:[%s1596_s3 + $0x10] sm:$0xff]  ;;  %vm123_vm2 = vcmask 261120   ;;  %v639_v18 = vlaneseq  ;;  %vm991_vm3 = vcmask 7168   ;;  %vm1008_vm4 = vcmask 15360  }
   0x2   :  { %v24_v4 = vld [vmem:[%s1595_s0] sm:$0xff]  ;;  %v1261_v5 = vpack.c.bf16 %v28_v2, %v27_v1  ;;  %1186 = vmatprep.subr.bf16.mxu0 %v1216_v0  ;;  %1127 = vmatprep.mubr.msk.f32.mxu0 %vm1217_vm1, %v1218_v3  ;;  %v30_v7 = vld [vmem:[%s1596_s3 + $0x8] sm:$0xff]  ;;  %v32_v11 = vld [vmem:[%s1596_s3 + $0x18] sm:$0xff]  ;;  %vm1025_vm5 = vcmask 23552   ;;  %vm1042_vm6 = vcmask 31744  }
   0x3   :  { %26 = vst.msk [vmem:[#allocation2] sm:$0xff] %vm25_vm0, %v24_v4  ;;  %v29_v6 = vld [vmem:[%s1596_s3] sm:$0xff]  ;;  %v1290_v12 = vpack.c.bf16 %v32_v11, %v31_v10  ;;  %v640_v19 = vshrl.u32 %v639_v18, 7 }
   0x4   :  { %1179 = vmatpush3.bf16.msra.mxu1 %v1261_v5  ;;  %1188 = vmatpush3.bf16.msra.mxu0 %v1261_v5  ;;  %v1277_v8 = vpack.c.bf16 %v30_v7, %v29_v6  ;;  %v1297_v13 = vld [vmem:[%s1597_s2] ss:$0 sm:$0xff] }
   0x5   :  { %1180 = vmatprep.subr.bf16.mxu1 %v1216_v0  ;;  %1189 = vmatprep.subr.bf16.mxu0 %v1216_v0  ;;  %v1308_v20 = vld [vmem:[%s1598_s4] ss:$0 sm:$0xff]  ;;  %v1310_v21 = vsub.s32 1, %v640_v19  ;;  %v1312_v22 = vsub.s32 0, %v640_v19  ;;  %v1322_v28 = vsub.s32 2, %v640_v19  ;;  %v1327_v30 = vsub.s32 3, %v640_v19 }
   0x6   :  { %v1330_v32 = vsub.s32 4, %v640_v19  ;;  %v1333_v34 = vsub.s32 5, %v640_v19  ;;  %v1336_v36 = vsub.s32 6, %v640_v19  ;;  %v1339_v38 = vsub.s32 7, %v640_v19 }
   0xa   :  { %v47_v9 = vld [vmem:[#allocation2] sm:$0xff] }
   0xb   :  { %1110 = vmatmul.mubr.msk.f32.vlgmr.msra.gmra.mrb[0].mxu1 %vm25_vm0, %v47_v9 }
   0xc   :  { %1182 = vmatpush3.bf16.msra.mxu1 %v1277_v8  ;;  %1120 = vmatprep.mubr.msk.f32.mxu1 %vm1217_vm1, %v1218_v3 }
   0xd   :  { %1183 = vmatprep.subr.bf16.mxu1 %v1216_v0 }
  0x10   :  { %1185 = vmatpush3.bf16.msra.mxu1 %v1290_v12 }
  0x11   :  { %1195 = vmatprep.subr.bf16.mxu1 %v1216_v0 }
  0xde   :  { %v118_v14 = vpop.f32.mrb[0].mxu1 }
  0xdf   :  { %v119_v15 = vadd.f32 %v1297_v13, %v118_v14  ;;  %v1111_v16 = vpop.f32.mrb[1].mxu1 }
  0xe1   :  { %v122_v17 = vmax.f32 %v119_v15, 0.0 }
  0xe3   :  { %1121 = vmatmul.mubr.msk.f32.vlgmr.msra.gmra.mrb[2].mxu1 %vm123_vm2, %v122_v17 }
  0xe4   :  { %1197 = vmatpush3.bf16.msra.mxu1 %v1261_v5  ;;  %1145 = vmatprep.mubr.msk.f32.mxu1 %vm1217_vm1, %v1218_v3 }
  0xe5   :  { %1198 = vmatprep.subr.bf16.mxu1 %v1216_v0 }
 0x1b6   :  { %v193_v23 = vpop.f32.mrb[2].mxu1 }
 0x1b7   :  { %v194_v24 = vadd.f32 %v1308_v20, %v193_v23  ;;  %v1122_v25 = vpop.f32.mrb[3].mxu1 }
 0x1b9   :  { %1128 = vmatmul.mubr.msk.f32.vlgmr.msra.gmra.mrb[0].mxu0 %vm25_vm0, %v194_v24  ;;  %v653_v26 = vrot.slane %v194_v24, %v1310_v21  ;;  %v642_v27 = vrot.slane %v194_v24, %v1312_v22  ;;  %v664_v29 = vrot.slane %v194_v24, %v1322_v28  ;;  %v675_v31 = vrot.slane %v194_v24, %v1327_v30 }
 0x1ba   :  { %1191 = vmatpush3.bf16.msra.mxu0 %v1277_v8  ;;  %1138 = vmatprep.mubr.msk.f32.mxu0 %vm1217_vm1, %v1218_v3  ;;  %v686_v33 = vrot.slane %v194_v24, %v1330_v32  ;;  %v697_v35 = vrot.slane %v194_v24, %v1333_v34  ;;  %v708_v37 = vrot.slane %v194_v24, %v1336_v36 }
 0x1bb   :  { %655 = vbcast.lane.b32.xlu1 %v653_v26, 256  ;;  %644 = vbcast.lane.b32.xlu0 %v642_v27, 256  ;;  %v719_v39 = vrot.slane %v194_v24, %v1339_v38 }
 0x1bc   :  { %1192 = vmatprep.subr.bf16.mxu0 %v1216_v0 }
 0x1be   :  { %1194 = vmatpush3.bf16.msra.mxu0 %v1290_v12 }
 0x1bf   :  { %659 = vbcast.lane.b32.xlu1 %v653_v26, 264  ;;  %648 = vbcast.lane.b32.xlu0 %v642_v27, 264 }
 0x1c0   :  { %1204 = vmatprep.subr.bf16.mxu0 %v1216_v0 }
 0x1c3   :  { %670 = vbcast.lane.b32.xlu1 %v664_v29, 264  ;;  %666 = vbcast.lane.b32.xlu0 %v664_v29, 256 }
 0x1c7   :  { %681 = vbcast.lane.b32.xlu1 %v675_v31, 264  ;;  %677 = vbcast.lane.b32.xlu0 %v675_v31, 256 }
 0x1cb   :  { %692 = vbcast.lane.b32.xlu1 %v686_v33, 264  ;;  %688 = vbcast.lane.b32.xlu0 %v686_v33, 256 }
 0x1cf   :  { %703 = vbcast.lane.b32.xlu1 %v697_v35, 264  ;;  %699 = vbcast.lane.b32.xlu0 %v697_v35, 256 }
 0x1d3   :  { %714 = vbcast.lane.b32.xlu1 %v708_v37, 264  ;;  %710 = vbcast.lane.b32.xlu0 %v708_v37, 256 }
 0x1d7   :  { %725 = vbcast.lane.b32.xlu1 %v719_v39, 264  ;;  %721 = vbcast.lane.b32.xlu0 %v719_v39, 256 }
 0x22d   :  { %v1382_v10 = vpop.permute.xlu1 %655  ;;  %v1384_v11 = vpop.permute.xlu0 %644 }
 0x231   :  { %v1388_v14 = vpop.permute.xlu0 %648 }
 0x235   :  { %v1392_v16 = vpop.permute.xlu0 %666 }
 0x239   :  { %v1396_v18 = vpop.permute.xlu0 %677 }
 0x23d   :  { %v1403_v26 = vpop.permute.xlu0 %688 }
 0x241   :  { %v1408_v31 = vpop.permute.xlu0 %699 }
 0x245   :  { %v1414_v35 = vpop.permute.xlu0 %710 }
 0x249   :  { %v1419_v39 = vpop.permute.xlu0 %721 }
 0x28c   :  { %v266_v40 = vpop.f32.mrb[0].mxu0 }
 0x28d   :  { %v267_v41 = vadd.f32 %v1297_v13, %v266_v40  ;;  %v1129_v42 = vpop.f32.mrb[1].mxu0 }
 0x28f   :  { %v270_v43 = vmax.f32 %v267_v41, 0.0 }
 0x291   :  { %1139 = vmatmul.mubr.msk.f32.vlgmr.msra.gmra.mrb[2].mxu0 %vm123_vm2, %v270_v43 }
 0x292   :  { %1206 = vmatpush3.bf16.msra.mxu0 %v1261_v5  ;;  %1163 = vmatprep.mubr.msk.f32.mxu0 %vm1217_vm1, %v1218_v3 }
 0x293   :  { %1207 = vmatprep.subr.bf16.mxu0 %v1216_v0 }
 0x364   :  { %v340_v44 = vpop.f32.mrb[2].mxu0 }
 0x365   :  { %v341_v45 = vadd.f32 %v1308_v20, %v340_v44  ;;  %v1140_v46 = vpop.f32.mrb[3].mxu0 }
 0x367   :  { %1146 = vmatmul.mubr.msk.f32.vlgmr.msra.gmra.mrb[4].mxu1 %vm25_vm0, %v341_v45  ;;  %v730_v47 = vrot.slane %v341_v45, %v1312_v22  ;;  %v741_v48 = vrot.slane %v341_v45, %v1310_v21  ;;  %v752_v49 = vrot.slane %v341_v45, %v1322_v28  ;;  %v763_v50 = vrot.slane %v341_v45, %v1327_v30 }
 0x368   :  { %1200 = vmatpush3.bf16.msra.mxu1 %v1277_v8  ;;  %1156 = vmatprep.mubr.msk.f32.mxu1 %vm1217_vm1, %v1218_v3  ;;  %v774_v51 = vrot.slane %v341_v45, %v1330_v32  ;;  %v785_v52 = vrot.slane %v341_v45, %v1333_v34  ;;  %v796_v53 = vrot.slane %v341_v45, %v1336_v36 }
 0x369   :  { %736 = vbcast.lane.b32.xlu1 %v730_v47, 264  ;;  %732 = vbcast.lane.b32.xlu0 %v730_v47, 256  ;;  %v807_v54 = vrot.slane %v341_v45, %v1339_v38 }
 0x36a   :  { %1201 = vmatprep.subr.bf16.mxu1 %v1216_v0 }
 0x36c   :  { %1203 = vmatpush3.bf16.msra.mxu1 %v1290_v12 }
 0x36d   :  { %747 = vbcast.lane.b32.xlu1 %v741_v48, 264  ;;  %743 = vbcast.lane.b32.xlu0 %v741_v48, 256 }
 0x371   :  { %758 = vbcast.lane.b32.xlu1 %v752_v49, 264  ;;  %754 = vbcast.lane.b32.xlu0 %v752_v49, 256 }
 0x375   :  { %769 = vbcast.lane.b32.xlu1 %v763_v50, 264  ;;  %765 = vbcast.lane.b32.xlu0 %v763_v50, 256 }
 0x379   :  { %780 = vbcast.lane.b32.xlu1 %v774_v51, 264  ;;  %776 = vbcast.lane.b32.xlu0 %v774_v51, 256 }
 0x37d   :  { %791 = vbcast.lane.b32.xlu1 %v785_v52, 264  ;;  %787 = vbcast.lane.b32.xlu0 %v785_v52, 256 }
 0x381   :  { %802 = vbcast.lane.b32.xlu1 %v796_v53, 264  ;;  %798 = vbcast.lane.b32.xlu0 %v796_v53, 256 }
 0x385   :  { %813 = vbcast.lane.b32.xlu1 %v807_v54, 264  ;;  %809 = vbcast.lane.b32.xlu0 %v807_v54, 256 }
 0x43a   :  { %v413_v55 = vpop.f32.mrb[4].mxu1 }
 0x43b   :  { %v414_v56 = vadd.f32 %v1297_v13, %v413_v55  ;;  %v1147_v57 = vpop.f32.mrb[5].mxu1 }
 0x43d   :  { %v417_v58 = vmax.f32 %v414_v56, 0.0 }
 0x43f   :  { %1157 = vmatmul.mubr.msk.f32.vlgmr.msra.gmra.mrb[6].mxu1 %vm123_vm2, %v417_v58 }
 0x512   :  { %v487_v59 = vpop.f32.mrb[6].mxu1 }
 0x513   :  { %v488_v60 = vadd.f32 %v1308_v20, %v487_v59  ;;  %v1158_v61 = vpop.f32.mrb[7].mxu1 }
 0x515   :  { %1164 = vmatmul.mubr.msk.f32.vlgmr.msra.gmra.mrb[4].mxu0 %vm25_vm0, %v488_v60  ;;  %v818_v62 = vrot.slane %v488_v60, %v1312_v22  ;;  %v829_v63 = vrot.slane %v488_v60, %v1310_v21  ;;  %v840_v1 = vrot.slane %v488_v60, %v1322_v28  ;;  %v851_v2 = vrot.slane %v488_v60, %v1327_v30 }
 0x516   :  { %1209 = vmatpush3.bf16.msra.mxu0 %v1277_v8  ;;  %1174 = vmatprep.mubr.msk.f32.mxu0 %vm1217_vm1, %v1218_v3  ;;  %v862_v4 = vrot.slane %v488_v60, %v1330_v32  ;;  %v884_v3 = vrot.slane %v488_v60, %v1336_v36  ;;  %v895_v5 = vrot.slane %v488_v60, %v1339_v38 }
 0x517   :  { %824 = vbcast.lane.b32.xlu1 %v818_v62, 264  ;;  %820 = vbcast.lane.b32.xlu0 %v818_v62, 256 }
 0x518   :  { %1210 = vmatprep.subr.bf16.mxu0 %v1216_v0  ;;  %v873_v0 = vrot.slane %v488_v60, %v1333_v34 }
 0x51a   :  { %1212 = vmatpush3.bf16.msra.mxu0 %v1290_v12  ;;  %v1386_v12 = vpop.permute.xlu1 %659 }
 0x51b   :  { %835 = vbcast.lane.b32.xlu1 %v829_v63, 264  ;;  %831 = vbcast.lane.b32.xlu0 %v829_v63, 256 }
 0x51e   :  { %v1390_v15 = vpop.permute.xlu1 %670 }
 0x51f   :  { %846 = vbcast.lane.b32.xlu1 %v840_v1, 264  ;;  %842 = vbcast.lane.b32.xlu0 %v840_v1, 256 }
 0x522   :  { %v1394_v17 = vpop.permute.xlu1 %681 }
 0x523   :  { %857 = vbcast.lane.b32.xlu1 %v851_v2, 264  ;;  %853 = vbcast.lane.b32.xlu0 %v851_v2, 256 }
 0x526   :  { %v1401_v25 = vpop.permute.xlu1 %692 }
 0x527   :  { %868 = vbcast.lane.b32.xlu1 %v862_v4, 264  ;;  %864 = vbcast.lane.b32.xlu0 %v862_v4, 256 }
 0x52a   :  { %v1406_v29 = vpop.permute.xlu1 %703 }
 0x52b   :  { %879 = vbcast.lane.b32.xlu1 %v873_v0, 264  ;;  %875 = vbcast.lane.b32.xlu0 %v873_v0, 256 }
 0x52e   :  { %v1412_v33 = vpop.permute.xlu1 %714 }
 0x52f   :  { %890 = vbcast.lane.b32.xlu1 %v884_v3, 264  ;;  %886 = vbcast.lane.b32.xlu0 %v884_v3, 256 }
 0x532   :  { %v1417_v37 = vpop.permute.xlu1 %725 }
 0x533   :  { %901 = vbcast.lane.b32.xlu1 %v895_v5, 264  ;;  %897 = vbcast.lane.b32.xlu0 %v895_v5, 256 }
 0x536   :  { %v737_v40 = vpop.permute.xlu1 %736 }
 0x537   :  { %v993_v5 = vsel %vm991_vm3, %v1388_v14, %v737_v40 }
 0x53a   :  { %v748_v43 = vpop.permute.xlu1 %747 }
 0x53e   :  { %v759_v44 = vpop.permute.xlu1 %758 }
 0x542   :  { %v770_v46 = vpop.permute.xlu1 %769 }
 0x546   :  { %v1424_v48 = vpop.permute.xlu1 %780 }
 0x54a   :  { %v1428_v49 = vpop.permute.xlu1 %791 }
 0x5e8   :  { %v560_v6 = vpop.f32.mrb[4].mxu0 }
 0x5e9   :  { %v561_v7 = vadd.f32 %v1297_v13, %v560_v6  ;;  %v1165_v8 = vpop.f32.mrb[5].mxu0 }
 0x5eb   :  { %v564_v9 = vmax.f32 %v561_v7, 0.0 }
 0x5ed   :  { %1175 = vmatmul.mubr.msk.f32.vlgmr.msra.gmra.mrb[6].mxu0 %vm123_vm2, %v564_v9 }
 0x6c0   :  { %v634_v13 = vpop.f32.mrb[6].mxu0 }
 0x6c1   :  { %v635_v19 = vadd.f32 %v1308_v20, %v634_v13  ;;  %v1176_v23 = vpop.f32.mrb[7].mxu0 }
 0x6c3   :  { %638 = vst.msk [vmem:[#allocation2] sm:$0xff] %vm25_vm0, %v635_v19  ;;  %v906_v24 = vrot.slane %v635_v19, %v1312_v22  ;;  %v917_v27 = vrot.slane %v635_v19, %v1310_v21  ;;  %v928_v20 = vrot.slane %v635_v19, %v1322_v28  ;;  %v939_v22 = vrot.slane %v635_v19, %v1327_v30  ;;  %v733_v30 = vpop.permute.xlu0 %732 }
 0x6c4   :  { %v950_v21 = vrot.slane %v635_v19, %v1330_v32  ;;  %v961_v28 = vrot.slane %v635_v19, %v1333_v34  ;;  %v972_v41 = vrot.slane %v635_v19, %v1336_v36  ;;  %v983_v42 = vrot.slane %v635_v19, %v1339_v38  ;;  %v1432_v36 = vpop.permute.xlu1 %802 }
 0x6c5   :  { %912 = vbcast.lane.b32.xlu1 %v906_v24, 264  ;;  %908 = vbcast.lane.b32.xlu0 %v906_v24, 256  ;;  %v992_v6 = vsel %vm991_vm3, %v1384_v11, %v733_v30  ;;  %v995_v11 = vsel %vm991_vm3, %v1386_v12, %v748_v43 }
 0x6c7   :  { %v744_v32 = vpop.permute.xlu0 %743 }
 0x6c8   :  { %v1436_v38 = vpop.permute.xlu1 %813  ;;  %v994_v14 = vsel %vm991_vm3, %v1382_v10, %v744_v32  ;;  %v997_v10 = vsel %vm991_vm3, %v1390_v15, %v759_v44  ;;  %v999_v15 = vsel %vm991_vm3, %v1394_v17, %v770_v46  ;;  %v1001_v17 = vsel %vm991_vm3, %v1401_v25, %v1424_v48 }
 0x6c9   :  { %923 = vbcast.lane.b32.xlu1 %v917_v27, 264  ;;  %919 = vbcast.lane.b32.xlu0 %v917_v27, 256  ;;  %v1003_v25 = vsel %vm991_vm3, %v1406_v29, %v1428_v49  ;;  %v1005_v29 = vsel %vm991_vm3, %v1412_v33, %v1432_v36  ;;  %v1007_v33 = vsel %vm991_vm3, %v1417_v37, %v1436_v38 }
 0x6cb   :  { %v755_v45 = vpop.permute.xlu0 %754 }
 0x6cc   :  { %v825_v53 = vpop.permute.xlu1 %824  ;;  %v996_v12 = vsel %vm991_vm3, %v1392_v16, %v755_v45 }
 0x6cd   :  { %934 = vbcast.lane.b32.xlu1 %v928_v20, 264  ;;  %930 = vbcast.lane.b32.xlu0 %v928_v20, 256  ;;  %v1010_v7 = vsel %vm1008_vm4, %v993_v5, %v825_v53 }
 0x6cf   :  { %v766_v47 = vpop.permute.xlu0 %765 }
 0x6d0   :  { %v836_v55 = vpop.permute.xlu1 %835  ;;  %v998_v16 = vsel %vm991_vm3, %v1396_v18, %v766_v47 }
 0x6d1   :  { %945 = vbcast.lane.b32.xlu1 %v939_v22, 264  ;;  %941 = vbcast.lane.b32.xlu0 %v939_v22, 256  ;;  %v1012_v24 = vsel %vm1008_vm4, %v995_v11, %v836_v55 }
 0x6d3   :  { %v1426_v34 = vpop.permute.xlu0 %776 }
 0x6d4   :  { %v847_v57 = vpop.permute.xlu1 %846  ;;  %v1000_v18 = vsel %vm991_vm3, %v1403_v26, %v1426_v34 }
 0x6d5   :  { %956 = vbcast.lane.b32.xlu1 %v950_v21, 264  ;;  %952 = vbcast.lane.b32.xlu0 %v950_v21, 256  ;;  %v1014_v40 = vsel %vm1008_vm4, %v997_v10, %v847_v57 }
 0x6d7   :  { %v1430_v50 = vpop.permute.xlu0 %787 }
 0x6d8   :  { %v858_v59 = vpop.permute.xlu1 %857  ;;  %v1002_v26 = vsel %vm991_vm3, %v1408_v31, %v1430_v50 }
 0x6d9   :  { %967 = vbcast.lane.b32.xlu1 %v961_v28, 264  ;;  %963 = vbcast.lane.b32.xlu0 %v961_v28, 256  ;;  %v1016_v44 = vsel %vm1008_vm4, %v999_v15, %v858_v59 }
 0x6db   :  { %v1434_v51 = vpop.permute.xlu0 %798 }
 0x6dc   :  { %v869_v61 = vpop.permute.xlu1 %868  ;;  %v1004_v31 = vsel %vm991_vm3, %v1414_v35, %v1434_v51 }
 0x6dd   :  { %978 = vbcast.lane.b32.xlu1 %v972_v41, 264  ;;  %974 = vbcast.lane.b32.xlu0 %v972_v41, 256  ;;  %v1018_v46 = vsel %vm1008_vm4, %v1001_v17, %v869_v61 }
 0x6df   :  { %v1438_v52 = vpop.permute.xlu0 %809 }
 0x6e0   :  { %v1440_v63 = vpop.permute.xlu1 %879  ;;  %v1006_v35 = vsel %vm991_vm3, %v1419_v39, %v1438_v52 }
 0x6e1   :  { %989 = vbcast.lane.b32.xlu1 %v983_v42, 264  ;;  %985 = vbcast.lane.b32.xlu0 %v983_v42, 256  ;;  %v1020_v48 = vsel %vm1008_vm4, %v1003_v25, %v1440_v63 }
 0x6e3   :  { %v821_v54 = vpop.permute.xlu0 %820 }
 0x6e4   :  { %v1444_v2 = vpop.permute.xlu1 %890  ;;  %v1009_v8 = vsel %vm1008_vm4, %v992_v6, %v821_v54 }
 0x6e5   :  { %v1022_v49 = vsel %vm1008_vm4, %v1005_v29, %v1444_v2 }
 0x6e7   :  { %v832_v56 = vpop.permute.xlu0 %831 }
 0x6e8   :  { %v1448_v0 = vpop.permute.xlu1 %901  ;;  %v1011_v27 = vsel %vm1008_vm4, %v994_v14, %v832_v56 }
 0x6e9   :  { %v1024_v36 = vsel %vm1008_vm4, %v1007_v33, %v1448_v0 }
 0x6eb   :  { %v843_v58 = vpop.permute.xlu0 %842 }
 0x6ec   :  { %v1013_v30 = vsel %vm1008_vm4, %v996_v12, %v843_v58 }
 0x6ef   :  { %v854_v60 = vpop.permute.xlu0 %853 }
 0x6f0   :  { %v1015_v45 = vsel %vm1008_vm4, %v998_v16, %v854_v60 }
 0x6f3   :  { %v865_v62 = vpop.permute.xlu0 %864 }
 0x6f4   :  { %v1017_v47 = vsel %vm1008_vm4, %v1000_v18, %v865_v62 }
 0x6f7   :  { %v1442_v1 = vpop.permute.xlu0 %875 }
 0x6f8   :  { %v1019_v34 = vsel %vm1008_vm4, %v1002_v26, %v1442_v1 }
 0x6fb   :  { %v1446_v4 = vpop.permute.xlu0 %886 }
 0x6fc   :  { %v1021_v50 = vsel %vm1008_vm4, %v1004_v31, %v1446_v4 }
 0x6ff   :  { %v1450_v3 = vpop.permute.xlu0 %897 }
 0x700   :  { %v1023_v51 = vsel %vm1008_vm4, %v1006_v35, %v1450_v3 }
 0x737   :  { %v913_v9 = vpop.permute.xlu1 %912  ;;  %v909_v13 = vpop.permute.xlu0 %908 }
 0x738   :  { %v1027_v19 = vsel %vm1025_vm5, %v1010_v7, %v913_v9  ;;  %v1026_v23 = vsel %vm1025_vm5, %v1009_v8, %v909_v13 }
 0x739   :  { %1044 = vst.msk [vmem:[%s1599_s5 + $0x8] sm:$0xff] %vm1042_vm6, %v1027_v19  ;;  %1043 = vst.msk [vmem:[%s1599_s5] sm:$0xff] %vm1042_vm6, %v1026_v23 }
 0x73b   :  { %v924_v20 = vpop.permute.xlu1 %923  ;;  %v920_v22 = vpop.permute.xlu0 %919 }
 0x73c   :  { %v1029_v21 = vsel %vm1025_vm5, %v1012_v24, %v924_v20  ;;  %v1028_v28 = vsel %vm1025_vm5, %v1011_v27, %v920_v22 }
 0x73d   :  { %1046 = vst.msk [vmem:[%s1599_s5 + $0x18] sm:$0xff] %vm1042_vm6, %v1029_v21  ;;  %1045 = vst.msk [vmem:[%s1599_s5 + $0x10] sm:$0xff] %vm1042_vm6, %v1028_v28 }
 0x73f   :  { %v935_v41 = vpop.permute.xlu1 %934  ;;  %v931_v42 = vpop.permute.xlu0 %930 }
 0x740   :  { %v1031_v43 = vsel %vm1025_vm5, %v1014_v40, %v935_v41  ;;  %v1030_v32 = vsel %vm1025_vm5, %v1013_v30, %v931_v42 }
 0x741   :  { %1048 = vst.msk [vmem:[%s1599_s5 + $0x28] sm:$0xff] %vm1042_vm6, %v1031_v43  ;;  %1047 = vst.msk [vmem:[%s1599_s5 + $0x20] sm:$0xff] %vm1042_vm6, %v1030_v32 }
 0x743   :  { %v946_v53 = vpop.permute.xlu1 %945  ;;  %v942_v54 = vpop.permute.xlu0 %941 }
 0x744   :  { %v1033_v55 = vsel %vm1025_vm5, %v1016_v44, %v946_v53  ;;  %v1032_v56 = vsel %vm1025_vm5, %v1015_v45, %v942_v54 }
 0x745   :  { %1050 = vst.msk [vmem:[%s1599_s5 + $0x38] sm:$0xff] %vm1042_vm6, %v1033_v55  ;;  %1049 = vst.msk [vmem:[%s1599_s5 + $0x30] sm:$0xff] %vm1042_vm6, %v1032_v56 }
 0x747   :  { %v957_v57 = vpop.permute.xlu1 %956  ;;  %v953_v58 = vpop.permute.xlu0 %952 }
 0x748   :  { %v1035_v59 = vsel %vm1025_vm5, %v1018_v46, %v957_v57  ;;  %v1034_v60 = vsel %vm1025_vm5, %v1017_v47, %v953_v58 }
 0x749   :  { %1052 = vst.msk [vmem:[%s1599_s5 + $0x48] sm:$0xff] %vm1042_vm6, %v1035_v59  ;;  %1051 = vst.msk [vmem:[%s1599_s5 + $0x40] sm:$0xff] %vm1042_vm6, %v1034_v60 }
 0x74b   :  { %v968_v61 = vpop.permute.xlu1 %967  ;;  %v964_v62 = vpop.permute.xlu0 %963 }
 0x74c   :  { %v1037_v5 = vsel %vm1025_vm5, %v1020_v48, %v968_v61  ;;  %v1036_v6 = vsel %vm1025_vm5, %v1019_v34, %v964_v62 }
 0x74d   :  { %1054 = vst.msk [vmem:[%s1599_s5 + $0x58] sm:$0xff] %vm1042_vm6, %v1037_v5  ;;  %1053 = vst.msk [vmem:[%s1599_s5 + $0x50] sm:$0xff] %vm1042_vm6, %v1036_v6 }
 0x74f   :  { %v979_v63 = vpop.permute.xlu1 %978  ;;  %v975_v1 = vpop.permute.xlu0 %974 }
 0x750   :  { %v1039_v7 = vsel %vm1025_vm5, %v1022_v49, %v979_v63  ;;  %v1038_v8 = vsel %vm1025_vm5, %v1021_v50, %v975_v1 }
 0x751   :  { %1056 = vst.msk [vmem:[%s1599_s5 + $0x68] sm:$0xff] %vm1042_vm6, %v1039_v7  ;;  %1055 = vst.msk [vmem:[%s1599_s5 + $0x60] sm:$0xff] %vm1042_vm6, %v1038_v8 }
 0x753   :  { %v990_v2 = vpop.permute.xlu1 %989  ;;  %v986_v4 = vpop.permute.xlu0 %985 }
 0x754   :  { %v1041_v9 = vsel %vm1025_vm5, %v1024_v36, %v990_v2  ;;  %v1040_v13 = vsel %vm1025_vm5, %v1023_v51, %v986_v4 }
 0x755   :  { %1058 = vst.msk [vmem:[%s1599_s5 + $0x78] sm:$0xff] %vm1042_vm6, %v1041_v9  ;;  %1057 = vst.msk [vmem:[%s1599_s5 + $0x70] sm:$0xff] %vm1042_vm6, %v1040_v13 }

</bundles_post_ra>
